<compile_context>
chip_gen: v5e
topology: v5e:2x2
jax: 0.10.0
libtpu: 0.0.40
codegen_flags: <defaults>
</compile_context>

<pallas_src>
import functools

import jax
import jax.numpy as jnp
from jax.experimental import pallas as pl
from jax.experimental.pallas import tpu as pltpu


def _mha_kernel(v_ref, k_ref, q_ref, wvt_ref, wkt_ref, wqt_ref, wot_ref, bo_ref,
                out_ref, *, heads, head_dim, b_tile, skv, sq):
    """One grid step == one tile of `b_tile` batch elements.

    v_ref/k_ref: (b_tile*skv, E), q_ref: (b_tile*sq, E); weights resident (E, E)."""
    dt = q_ref.dtype

    # --- projections: one lane-dense (rows, E) @ (E, E) matmul each (block-diag W.T),
    #     native-dtype operands, f32 accumulation.  Softmax scale is folded into wqt.
    vproj = jnp.dot(v_ref[...], wvt_ref[...], preferred_element_type=jnp.float32).astype(dt)
    kproj = jnp.dot(k_ref[...], wkt_ref[...], preferred_element_type=jnp.float32).astype(dt)
    qproj = jnp.dot(q_ref[...], wqt_ref[...], preferred_element_type=jnp.float32).astype(dt)

    # --- relayout to head-major (heads*b_tile, S, d): static lane slices only
    #     (pure layout plumbing; all compute below is batched over heads*b_tile).
    def split_heads(x2d, s):
        parts = [x2d[:, h * head_dim:(h + 1) * head_dim].reshape(b_tile, s, head_dim)
                 for h in range(heads)]
        return jnp.concatenate(parts, axis=0)          # index = h * b_tile + b

    vh = split_heads(vproj, skv)                       # (H*B, Skv, d)
    kh = split_heads(kproj, skv)                       # (H*B, Skv, d)
    qh = split_heads(qproj, sq)                        # (H*B, Sq,  d)

    # --- batched attention across the merged (heads*batch) axis.
    #     NOTE: the module scales energy by sqrt(embed_size), NOT sqrt(head_dim);
    #     that scale is already folded into the Q projection weight.
    energy = jnp.einsum('bqd,bkd->bqk', qh, kh,
                        preferred_element_type=jnp.float32)          # (H*B, Sq, Skv) f32
    m = jnp.max(energy, axis=-1, keepdims=True)
    p = jnp.exp(energy - m)
    denom = jnp.sum(p, axis=-1, keepdims=True)                       # (H*B, Sq, 1)
    ctx = jnp.einsum('bqk,bkd->bqd', p.astype(dt), vh,
                     preferred_element_type=jnp.float32)             # (H*B, Sq, d) f32
    # normalize AFTER P@V: O(head_dim) elementwise work per row, not O(Skv)
    ctx = ctx * pl.reciprocal(denom, approx=False)

    # --- back to concatenated (b_tile*Sq, E) layout and fc_out (pre-transposed Wo).
    concat = jnp.concatenate(
        [ctx[h * b_tile:(h + 1) * b_tile].reshape(b_tile * sq, head_dim)
         for h in range(heads)], axis=-1).astype(dt)                 # (B*Sq, E)
    out = jnp.dot(concat, wot_ref[...], preferred_element_type=jnp.float32) + bo_ref[...]
    out_ref[...] = out.astype(out_ref.dtype)


def _pick_batch_tile(n, skv, sq, e, itemsize):
    """Largest batch tile that divides n, keeps blocks sublane-aligned, and stays
    well under a conservative per-step VMEM budget (double-buffering headroom on
    all generations, incl. v7x's 64 MiB VMEM)."""
    budget = 4 * 1024 * 1024
    per_batch = (2 * skv + 2 * sq) * e * itemsize
    bt = max(1, min(n, budget // max(per_batch, 1)))
    while bt > 1 and (n % bt or (bt < n and ((bt * skv) % 8 or (bt * sq) % 8))):
        bt -= 1
    if bt < n and ((bt * skv) % 8 or (bt * sq) % 8):
        bt = n  # fall back to a single full-extent block (always legal)
    return bt


def multi_head_attention(values, keys, queries, params, *, heads):
    """values/keys: (N, Skv, E), queries: (N, Sq, E).  params = (wv, wk, wq, wo, bo)
    in torch.nn.Linear layout: wv/wk/wq (d, d), wo (E, E), bo (E,)."""
    n, skv, e = values.shape
    sq = queries.shape[1]
    d = e // heads
    assert d * heads == e, "embed_size must be divisible by heads"
    assert keys.shape == (n, skv, e)

    wv, wk, wq, wo, bo = params
    scale = 1.0 / (float(e) ** 0.5)          # module divides energy by sqrt(embed_size)

    # Wrapper-side (free XLA) weight prep: pre-transposed, block-diagonal projections,
    # softmax scale folded into Q's weight, fc_out weight pre-transposed.
    eye = jnp.eye(heads, dtype=wv.dtype)
    wvt = jnp.kron(eye, wv.T)                                # (E, E)
    wkt = jnp.kron(eye, wk.T)                                # (E, E)
    wqt = jnp.kron(eye, wq.T) * jnp.asarray(scale, wq.dtype) # (E, E), scale folded in
    wot = wo.T                                               # (E, E)
    bo2 = bo.reshape(1, e)

    # Flatten (N, S, E) -> (N*S, E) in the wrapper (free): kernel blocks are plain
    # 2-D row blocks and no minor-dim reshapes are needed in-kernel.
    v2 = values.reshape(n * skv, e)
    k2 = keys.reshape(n * skv, e)
    q2 = queries.reshape(n * sq, e)

    b_tile = _pick_batch_tile(n, skv, sq, e, jnp.dtype(values.dtype).itemsize)
    grid = (n // b_tile,)

    kernel = functools.partial(_mha_kernel, heads=heads, head_dim=d,
                               b_tile=b_tile, skv=skv, sq=sq)

    in_specs = [
        pl.BlockSpec((b_tile * skv, e), lambda i: (i, 0)),   # values  (flat rows)
        pl.BlockSpec((b_tile * skv, e), lambda i: (i, 0)),   # keys    (flat rows)
        pl.BlockSpec((b_tile * sq, e),  lambda i: (i, 0)),   # queries (flat rows)
        pl.BlockSpec((e, e), lambda i: (0, 0)),              # W_values.T  (block-diag)
        pl.BlockSpec((e, e), lambda i: (0, 0)),              # W_keys.T    (block-diag)
        pl.BlockSpec((e, e), lambda i: (0, 0)),              # W_queries.T (block-diag, scaled)
        pl.BlockSpec((e, e), lambda i: (0, 0)),              # W_fc_out.T
        pl.BlockSpec((1, e), lambda i: (0, 0)),              # b_fc_out
    ]
    out_specs = pl.BlockSpec((b_tile * sq, e), lambda i: (i, 0))

    out2 = pl.pallas_call(
        kernel,
        out_shape=jax.ShapeDtypeStruct((n * sq, e), queries.dtype),
        grid=grid,
        in_specs=in_specs,
        out_specs=out_specs,
        compiler_params=pltpu.CompilerParams(
            dimension_semantics=("parallel",),     # batch axis: megacore-shardable
            vmem_limit_bytes=32 * 1024 * 1024,
        ),
    )(v2, k2, q2, wvt, wkt, wqt, wot, bo2)

    return out2.reshape(n, sq, e)


def _reference(values, keys, queries, params, *, heads):
    """Pure-JAX reference replicating the PyTorch forward exactly."""
    wv, wk, wq, wo, bo = params
    n, skv, e = values.shape
    sq = queries.shape[1]
    d = e // heads
    v = values.reshape(n, skv, heads, d) @ wv.T
    k = keys.reshape(n, skv, heads, d) @ wk.T
    q = queries.reshape(n, sq, heads, d) @ wq.T
    energy = jnp.einsum('nqhd,nkhd->nhqk', q, k)
    attn = jax.nn.softmax(energy / (e ** 0.5), axis=3)
    out = jnp.einsum('nhql,nlhd->nqhd', attn, v).reshape(n, sq, heads * d)
    return out @ wo.T + bo


if __name__ == "__main__":
    # Small shapes consistent with the module: embed_size=32, heads=4 -> head_dim=8
    batch, seq, embed, heads = 2, 8, 32, 4
    head_dim = embed // heads

    key = jax.random.PRNGKey(0)
    k1, k2, k3, k4, k5, k6, k7, k8 = jax.random.split(key, 8)

    values  = jax.random.normal(k1, (batch, seq, embed), dtype=jnp.float32)
    keys_in = jax.random.normal(k2, (batch, seq, embed), dtype=jnp.float32)
    queries = jax.random.normal(k3, (batch, seq, embed), dtype=jnp.float32)

    # Deterministic parameter init (torch.nn.Linear shapes: (out_features, in_features)).
    wv = jax.random.normal(k4, (head_dim, head_dim), dtype=jnp.float32) * 0.1
    wk = jax.random.normal(k5, (head_dim, head_dim), dtype=jnp.float32) * 0.1
    wq = jax.random.normal(k6, (head_dim, head_dim), dtype=jnp.float32) * 0.1
    wo = jax.random.normal(k7, (embed, embed), dtype=jnp.float32) * 0.1
    bo = jax.random.normal(k8, (embed,), dtype=jnp.float32) * 0.1
    params = (wv, wk, wq, wo, bo)

    out = multi_head_attention(values, keys_in, queries, params, heads=heads)
    out = jax.block_until_ready(out)

    ref = _reference(values, keys_in, queries, params, heads=heads)
    assert out.shape == (batch, seq, embed)
    assert jnp.allclose(out, ref, atol=2e-5, rtol=2e-5), "mismatch vs reference"

    print("KERNEL_OK")
</pallas_src>

<mosaic_0001>
module attributes {stable_mosaic.version = 11 : i64} {
  func.func @_mha_kernel(%arg0: i32, %arg1: memref<16x32xf32, #tpu.memory_space<vmem>>, %arg2: memref<16x32xf32, #tpu.memory_space<vmem>>, %arg3: memref<16x32xf32, #tpu.memory_space<vmem>>, %arg4: memref<32x32xf32, #tpu.memory_space<vmem>>, %arg5: memref<32x32xf32, #tpu.memory_space<vmem>>, %arg6: memref<32x32xf32, #tpu.memory_space<vmem>>, %arg7: memref<32x32xf32, #tpu.memory_space<vmem>>, %arg8: memref<1x32xf32, #tpu.memory_space<vmem>>, %arg9: memref<16x32xf32, #tpu.memory_space<vmem>>) attributes {dimension_semantics = [#tpu.dimension_semantics<parallel>], iteration_bounds = array<i64: 1>, scalar_prefetch = 0 : i64, scratch_operands = 0 : i64, tpu.core_type = #tpu.core_type<tc>, window_params = [{transform_indices = @transform_0, window_bounds = array<i64: 16, 32>}, {transform_indices = @transform_1, window_bounds = array<i64: 16, 32>}, {transform_indices = @transform_2, window_bounds = array<i64: 16, 32>}, {pipeline_mode = #tpu.pipeline_mode<synchronous>, transform_indices = @transform_3, window_bounds = array<i64: 32, 32>}, {pipeline_mode = #tpu.pipeline_mode<synchronous>, transform_indices = @transform_4, window_bounds = array<i64: 32, 32>}, {pipeline_mode = #tpu.pipeline_mode<synchronous>, transform_indices = @transform_5, window_bounds = array<i64: 32, 32>}, {pipeline_mode = #tpu.pipeline_mode<synchronous>, transform_indices = @transform_6, window_bounds = array<i64: 32, 32>}, {pipeline_mode = #tpu.pipeline_mode<synchronous>, transform_indices = @transform_7, window_bounds = array<i64: 1, 32>}, {transform_indices = @transform_8, window_bounds = array<i64: 16, 32>}]} {
    %c0 = arith.constant 0 : index
    %c0_0 = arith.constant 0 : index
    %0 = vector.load %arg1[%c0, %c0_0] : memref<16x32xf32, #tpu.memory_space<vmem>>, vector<16x32xf32>
    %c0_1 = arith.constant 0 : index
    %c0_2 = arith.constant 0 : index
    %1 = vector.load %arg4[%c0_1, %c0_2] : memref<32x32xf32, #tpu.memory_space<vmem>>, vector<32x32xf32>
    %cst = arith.constant dense<0.000000e+00> : vector<16x32xf32>
    %2 = tpu.matmul %0, %1, %cst {dimension_numbers = #tpu.dot_dimension_numbers<[1], [0], [0], [1], [0, 0, 1, 1], [], []>} : vector<16x32xf32>, vector<32x32xf32>, vector<16x32xf32> -> vector<16x32xf32>
    %c0_3 = arith.constant 0 : index
    %c0_4 = arith.constant 0 : index
    %3 = vector.load %arg2[%c0_3, %c0_4] : memref<16x32xf32, #tpu.memory_space<vmem>>, vector<16x32xf32>
    %c0_5 = arith.constant 0 : index
    %c0_6 = arith.constant 0 : index
    %4 = vector.load %arg5[%c0_5, %c0_6] : memref<32x32xf32, #tpu.memory_space<vmem>>, vector<32x32xf32>
    %cst_7 = arith.constant dense<0.000000e+00> : vector<16x32xf32>
    %5 = tpu.matmul %3, %4, %cst_7 {dimension_numbers = #tpu.dot_dimension_numbers<[1], [0], [0], [1], [0, 0, 1, 1], [], []>} : vector<16x32xf32>, vector<32x32xf32>, vector<16x32xf32> -> vector<16x32xf32>
    %c0_8 = arith.constant 0 : index
    %c0_9 = arith.constant 0 : index
    %6 = vector.load %arg3[%c0_8, %c0_9] : memref<16x32xf32, #tpu.memory_space<vmem>>, vector<16x32xf32>
    %c0_10 = arith.constant 0 : index
    %c0_11 = arith.constant 0 : index
    %7 = vector.load %arg6[%c0_10, %c0_11] : memref<32x32xf32, #tpu.memory_space<vmem>>, vector<32x32xf32>
    %cst_12 = arith.constant dense<0.000000e+00> : vector<16x32xf32>
    %8 = tpu.matmul %6, %7, %cst_12 {dimension_numbers = #tpu.dot_dimension_numbers<[1], [0], [0], [1], [0, 0, 1, 1], [], []>} : vector<16x32xf32>, vector<32x32xf32>, vector<16x32xf32> -> vector<16x32xf32>
    %9 = vector.extract_strided_slice %2 {offsets = [0, 0], sizes = [16, 8], strides = [1, 1]} : vector<16x32xf32> to vector<16x8xf32>
    %10 = vector.shape_cast %9 : vector<16x8xf32> to vector<2x8x8xf32>
    %11 = vector.extract_strided_slice %2 {offsets = [0, 8], sizes = [16, 8], strides = [1, 1]} : vector<16x32xf32> to vector<16x8xf32>
    %12 = vector.shape_cast %11 : vector<16x8xf32> to vector<2x8x8xf32>
    %13 = vector.extract_strided_slice %2 {offsets = [0, 16], sizes = [16, 8], strides = [1, 1]} : vector<16x32xf32> to vector<16x8xf32>
    %14 = vector.shape_cast %13 : vector<16x8xf32> to vector<2x8x8xf32>
    %15 = vector.extract_strided_slice %2 {offsets = [0, 24], sizes = [16, 8], strides = [1, 1]} : vector<16x32xf32> to vector<16x8xf32>
    %16 = vector.shape_cast %15 : vector<16x8xf32> to vector<2x8x8xf32>
    %17 = tpu.concatenate %10, %12, %14, %16 in 0 : vector<2x8x8xf32>, vector<2x8x8xf32>, vector<2x8x8xf32>, vector<2x8x8xf32> -> vector<8x8x8xf32>
    %18 = vector.extract_strided_slice %5 {offsets = [0, 0], sizes = [16, 8], strides = [1, 1]} : vector<16x32xf32> to vector<16x8xf32>
    %19 = vector.shape_cast %18 : vector<16x8xf32> to vector<2x8x8xf32>
    %20 = vector.extract_strided_slice %5 {offsets = [0, 8], sizes = [16, 8], strides = [1, 1]} : vector<16x32xf32> to vector<16x8xf32>
    %21 = vector.shape_cast %20 : vector<16x8xf32> to vector<2x8x8xf32>
    %22 = vector.extract_strided_slice %5 {offsets = [0, 16], sizes = [16, 8], strides = [1, 1]} : vector<16x32xf32> to vector<16x8xf32>
    %23 = vector.shape_cast %22 : vector<16x8xf32> to vector<2x8x8xf32>
    %24 = vector.extract_strided_slice %5 {offsets = [0, 24], sizes = [16, 8], strides = [1, 1]} : vector<16x32xf32> to vector<16x8xf32>
    %25 = vector.shape_cast %24 : vector<16x8xf32> to vector<2x8x8xf32>
    %26 = tpu.concatenate %19, %21, %23, %25 in 0 : vector<2x8x8xf32>, vector<2x8x8xf32>, vector<2x8x8xf32>, vector<2x8x8xf32> -> vector<8x8x8xf32>
    %27 = vector.extract_strided_slice %8 {offsets = [0, 0], sizes = [16, 8], strides = [1, 1]} : vector<16x32xf32> to vector<16x8xf32>
    %28 = vector.shape_cast %27 : vector<16x8xf32> to vector<2x8x8xf32>
    %29 = vector.extract_strided_slice %8 {offsets = [0, 8], sizes = [16, 8], strides = [1, 1]} : vector<16x32xf32> to vector<16x8xf32>
    %30 = vector.shape_cast %29 : vector<16x8xf32> to vector<2x8x8xf32>
    %31 = vector.extract_strided_slice %8 {offsets = [0, 16], sizes = [16, 8], strides = [1, 1]} : vector<16x32xf32> to vector<16x8xf32>
    %32 = vector.shape_cast %31 : vector<16x8xf32> to vector<2x8x8xf32>
    %33 = vector.extract_strided_slice %8 {offsets = [0, 24], sizes = [16, 8], strides = [1, 1]} : vector<16x32xf32> to vector<16x8xf32>
    %34 = vector.shape_cast %33 : vector<16x8xf32> to vector<2x8x8xf32>
    %35 = tpu.concatenate %28, %30, %32, %34 in 0 : vector<2x8x8xf32>, vector<2x8x8xf32>, vector<2x8x8xf32>, vector<2x8x8xf32> -> vector<8x8x8xf32>
    "tpu.trace_start"() <{level = 10 : i32, message = "bqd,bkd->bqk"}> : () -> ()
    %cst_13 = arith.constant dense<0.000000e+00> : vector<8x8x8xf32>
    %36 = tpu.matmul %35, %26, %cst_13 {dimension_numbers = #tpu.dot_dimension_numbers<[2], [2], [1], [1], [0, 0, 0, 1, 1, 1], [0], [0]>} : vector<8x8x8xf32>, vector<8x8x8xf32>, vector<8x8x8xf32> -> vector<8x8x8xf32>
    "tpu.trace_stop"() : () -> ()
    %cst_14 = arith.constant dense<0xFF800000> : vector<8x8xf32>
    %37 = vector.multi_reduction <maximumf>, %36, %cst_14 [2] : vector<8x8x8xf32> to vector<8x8xf32>
    %38 = vector.shape_cast %37 : vector<8x8xf32> to vector<8x8x1xf32>
    %39 = vector.broadcast %38 : vector<8x8x1xf32> to vector<8x8x8xf32>
    %40 = arith.subf %36, %39 : vector<8x8x8xf32>
    %41 = math.exp %40 : vector<8x8x8xf32>
    %cst_15 = arith.constant dense<0.000000e+00> : vector<8x8xf32>
    %42 = vector.multi_reduction <add>, %41, %cst_15 [2] : vector<8x8x8xf32> to vector<8x8xf32>
    %43 = vector.shape_cast %42 : vector<8x8xf32> to vector<8x8x1xf32>
    "tpu.trace_start"() <{level = 10 : i32, message = "bqk,bkd->bqd"}> : () -> ()
    %cst_16 = arith.constant dense<0.000000e+00> : vector<8x8x8xf32>
    %44 = tpu.matmul %41, %17, %cst_16 {dimension_numbers = #tpu.dot_dimension_numbers<[2], [1], [1], [2], [0, 0, 0, 1, 1, 2], [0], [0]>} : vector<8x8x8xf32>, vector<8x8x8xf32>, vector<8x8x8xf32> -> vector<8x8x8xf32>
    "tpu.trace_stop"() : () -> ()
    %45 = tpu.reciprocal %43 : vector<8x8x1xf32> -> vector<8x8x1xf32>
    %46 = vector.broadcast %45 : vector<8x8x1xf32> to vector<8x8x8xf32>
    %47 = arith.mulf %44, %46 : vector<8x8x8xf32>
    %48 = vector.extract_strided_slice %47 {offsets = [0, 0, 0], sizes = [2, 8, 8], strides = [1, 1, 1]} : vector<8x8x8xf32> to vector<2x8x8xf32>
    %49 = vector.shape_cast %48 : vector<2x8x8xf32> to vector<16x8xf32>
    %50 = vector.extract_strided_slice %47 {offsets = [2, 0, 0], sizes = [2, 8, 8], strides = [1, 1, 1]} : vector<8x8x8xf32> to vector<2x8x8xf32>
    %51 = vector.shape_cast %50 : vector<2x8x8xf32> to vector<16x8xf32>
    %52 = vector.extract_strided_slice %47 {offsets = [4, 0, 0], sizes = [2, 8, 8], strides = [1, 1, 1]} : vector<8x8x8xf32> to vector<2x8x8xf32>
    %53 = vector.shape_cast %52 : vector<2x8x8xf32> to vector<16x8xf32>
    %54 = vector.extract_strided_slice %47 {offsets = [6, 0, 0], sizes = [2, 8, 8], strides = [1, 1, 1]} : vector<8x8x8xf32> to vector<2x8x8xf32>
    %55 = vector.shape_cast %54 : vector<2x8x8xf32> to vector<16x8xf32>
    %56 = tpu.concatenate %49, %51, %53, %55 in 1 : vector<16x8xf32>, vector<16x8xf32>, vector<16x8xf32>, vector<16x8xf32> -> vector<16x32xf32>
    %c0_17 = arith.constant 0 : index
    %c0_18 = arith.constant 0 : index
    %57 = vector.load %arg7[%c0_17, %c0_18] : memref<32x32xf32, #tpu.memory_space<vmem>>, vector<32x32xf32>
    %cst_19 = arith.constant dense<0.000000e+00> : vector<16x32xf32>
    %58 = tpu.matmul %56, %57, %cst_19 {dimension_numbers = #tpu.dot_dimension_numbers<[1], [0], [0], [1], [0, 0, 1, 1], [], []>} : vector<16x32xf32>, vector<32x32xf32>, vector<16x32xf32> -> vector<16x32xf32>
    %c0_20 = arith.constant 0 : index
    %c0_21 = arith.constant 0 : index
    %59 = vector.load %arg8[%c0_20, %c0_21] : memref<1x32xf32, #tpu.memory_space<vmem>>, vector<1x32xf32>
    %60 = vector.broadcast %59 : vector<1x32xf32> to vector<16x32xf32>
    %61 = arith.addf %58, %60 : vector<16x32xf32>
    %c0_22 = arith.constant 0 : index
    %c0_23 = arith.constant 0 : index
    %62 = vector.load %arg9[%c0_22, %c0_23] : memref<16x32xf32, #tpu.memory_space<vmem>>, vector<16x32xf32>
    tpu.vector_store %arg9[%c0_22, %c0_23], %61 {strides = array<i32>} : memref<16x32xf32, #tpu.memory_space<vmem>>, vector<16x32xf32>,
    return
  }
  func.func @transform_0(%arg0: i32) -> (i32, i32) {
    %c0_i32 = arith.constant 0 : i32
    %c0_i32_0 = arith.constant 0 : i32
    return %arg0, %c0_i32 : i32, i32
  }
  func.func @transform_1(%arg0: i32) -> (i32, i32) {
    %c0_i32 = arith.constant 0 : i32
    %c0_i32_0 = arith.constant 0 : i32
    return %arg0, %c0_i32 : i32, i32
  }
  func.func @transform_2(%arg0: i32) -> (i32, i32) {
    %c0_i32 = arith.constant 0 : i32
    %c0_i32_0 = arith.constant 0 : i32
    return %arg0, %c0_i32 : i32, i32
  }
  func.func @transform_3(%arg0: i32) -> (i32, i32) {
    %c0_i32 = arith.constant 0 : i32
    %c0_i32_0 = arith.constant 0 : i32
    %c0_i32_1 = arith.constant 0 : i32
    return %c0_i32, %c0_i32_0 : i32, i32
  }
  func.func @transform_4(%arg0: i32) -> (i32, i32) {
    %c0_i32 = arith.constant 0 : i32
    %c0_i32_0 = arith.constant 0 : i32
    %c0_i32_1 = arith.constant 0 : i32
    return %c0_i32, %c0_i32_0 : i32, i32
  }
  func.func @transform_5(%arg0: i32) -> (i32, i32) {
    %c0_i32 = arith.constant 0 : i32
    %c0_i32_0 = arith.constant 0 : i32
    %c0_i32_1 = arith.constant 0 : i32
    return %c0_i32, %c0_i32_0 : i32, i32
  }
  func.func @transform_6(%arg0: i32) -> (i32, i32) {
    %c0_i32 = arith.constant 0 : i32
    %c0_i32_0 = arith.constant 0 : i32
    %c0_i32_1 = arith.constant 0 : i32
    return %c0_i32, %c0_i32_0 : i32, i32
  }
  func.func @transform_7(%arg0: i32) -> (i32, i32) {
    %c0_i32 = arith.constant 0 : i32
    %c0_i32_0 = arith.constant 0 : i32
    %c0_i32_1 = arith.constant 0 : i32
    return %c0_i32, %c0_i32_0 : i32, i32
  }
  func.func @transform_8(%arg0: i32) -> (i32, i32) {
    %c0_i32 = arith.constant 0 : i32
    %c0_i32_0 = arith.constant 0 : i32
    return %arg0, %c0_i32 : i32, i32
  }
}

</mosaic_0001>

<bundles_post_ra>
// kernel: tpu_custom_call.1
= control target key start
LH: loop header
LB: loop body
LE: loop exit
PB: predicated region body
PF: predicated region fallthrough
CT: control target
= control target key end

     0   :  { %13 = vsyncpa [#allocation3], 0  ;;  %s1462_s0 = inlined_call_operand.hbm [shape: f32[16,32], index: 0, kind: input, shape index: {}]   ;;  %s1463_s1 = inlined_call_operand.hbm [shape: f32[16,32], index: 1, kind: input, shape index: {}]   ;;  %s1464_s2 = inlined_call_operand.hbm [shape: f32[16,32], index: 2, kind: input, shape index: {}]   ;;  %s1465_s3 = inlined_call_operand.hbm [shape: f32[32,32], index: 3, kind: input, shape index: {}]   ;;  %s1466_s4 = inlined_call_operand.hbm [shape: f32[32,32], index: 4, kind: input, shape index: {}]   ;;  %s1467_s5 = inlined_call_operand.hbm [shape: f32[32,32], index: 5, kind: input, shape index: {}]   ;;  %s1468_s6 = inlined_call_operand.hbm [shape: f32[32,32], index: 6, kind: input, shape index: {}]   ;;  %s1469_s7 = inlined_call_operand.vmem [shape: f32[1,32], index: 7, kind: input, shape index: {}]   ;;  %s1470_s8 = inlined_call_operand.hbm [shape: f32[16,32], index: 8, kind: output, shape index: {}]  }
   0x1   :  { %14 = vsyncpa [#allocation6], 0 }
   0x2   :  { %15 = vsyncpa [#allocation9], 0 }
   0x3   :  { %16 = vsyncpa [#allocation12], 0 }
   0x4   :  { %17 = vsyncpa [#allocation4], 0  ;;  %s35_s29 = sshll.u32 %s1463_s1, 4  ;;  %s1246_s30 = smov [#allocation5]   ;;  %s36_s29 = int_to_ptr.hbm [resolvable:$true] %s35_s29 }
   0x5   :  { %s37_s9 = sshll.u32 %s1246_s30, 4  ;;  %s61_s12 = sshll.u32 %s1465_s3, 4  ;;  %s38_s9 = int_to_ptr.vmem [resolvable:$true] %s37_s9  ;;  %s62_s12 = int_to_ptr.hbm [resolvable:$true] %s61_s12 }
   0x6   :  { %s1247_s13 = smov 128   ;;  %s1248_s14 = smov 8  }
   0x7   :  { %43 = dma.hbm_to_vmem [thread:$0]  %s36_s29, 256, %s38_s9, [#allocation6], %s1247_s13, %s1247_s13, %s1248_s14  }
   0x8   :  { %s1249_s15 = smov [#allocation8]   ;;  %s87_s1 = sshll.u32 %s1467_s5, 4  ;;  %s88_s1 = int_to_ptr.hbm [resolvable:$true] %s87_s1 }
   0x9   :  { %s63_s16 = sshll.u32 %s1249_s15, 4  ;;  %s22_s20 = sshll.u32 %s1462_s0, 4  ;;  %s64_s16 = int_to_ptr.vmem [resolvable:$true] %s63_s16  ;;  %s23_s20 = int_to_ptr.hbm [resolvable:$true] %s22_s20 }
   0xa   :  { %69 = dma.hbm_to_vmem [thread:$0]  %s62_s12, 512, %s64_s16, [#allocation9], %s1247_s13, %s1247_s13, %s1248_s14  }
   0xb   :  { %s1250_s21 = smov [#allocation11]   ;;  %s1251_s23 = smov [#allocation2]  }
   0xc   :  { %s89_s22 = sshll.u32 %s1250_s21, 4  ;;  %s24_s5 = sshll.u32 %s1251_s23, 4  ;;  %s90_s22 = int_to_ptr.vmem [resolvable:$true] %s89_s22  ;;  %s25_s5 = int_to_ptr.vmem [resolvable:$true] %s24_s5 }
   0xd   :  { %95 = dma.hbm_to_vmem [thread:$0]  %s88_s1, 512, %s90_s22, [#allocation12], %s1247_s13, %s1247_s13, %s1248_s14  }
   0xe   :  { %s48_s26 = sshll.u32 %s1464_s2, 4  ;;  %s74_s28 = sshll.u32 %s1466_s4, 4  ;;  %s49_s26 = int_to_ptr.hbm [resolvable:$true] %s48_s26  ;;  %s75_s28 = int_to_ptr.hbm [resolvable:$true] %s74_s28 }
   0xf   :  { %30 = dma.hbm_to_vmem [thread:$0]  %s23_s20, 256, %s25_s5, [#allocation3], %s1247_s13, %s1247_s13, %s1248_s14  }
  0x10   :  { %s1252_s29 = smov [#allocation7]   ;;  %s1253_s9 = smov [#allocation10]  }
  0x11   :  { %s50_s30 = sshll.u32 %s1252_s29, 4  ;;  %s76_s2 = sshll.u32 %s1253_s9, 4  ;;  %s51_s30 = int_to_ptr.vmem [resolvable:$true] %s50_s30  ;;  %s77_s2 = int_to_ptr.vmem [resolvable:$true] %s76_s2 }
  0x12   :  { %56 = dma.hbm_to_vmem [thread:$0]  %s49_s26, 256, %s51_s30, [#allocation6], %s1247_s13, %s1247_s13, %s1248_s14  }
  0x13   :  { %s100_s12 = sshll.u32 %s1468_s6, 4  ;;  %s1254_s4 = smov [#allocation13]   ;;  %s101_s12 = int_to_ptr.hbm [resolvable:$true] %s100_s12 }
  0x14   :  { %82 = dma.hbm_to_vmem [thread:$0]  %s75_s28, 512, %s77_s2, [#allocation9], %s1247_s13, %s1247_s13, %s1248_s14  }
  0x15   :  { %s102_s15 = sshll.u32 %s1254_s4, 4  ;;  %s103_s15 = int_to_ptr.vmem [resolvable:$true] %s102_s15 }
  0x16   :  { %108 = dma.hbm_to_vmem [thread:$0]  %s101_s12, 512, %s103_s15, [#allocation12], %s1247_s13, %s1247_s13, %s1248_s14  }
  0x17   :  { %1236 = dma.done.wait [#allocation3], 256  }
  0x18   :  { %1237 = vsyncadd [#allocation3], 4294967040 }
  0x19   :  { %1238 = dma.done.wait [#allocation6], 512  }
  0x1a   :  { %1239 = vsyncadd [#allocation6], 4294966784 }
  0x1b   :  { %1240 = dma.done.wait [#allocation9], 1024  }
  0x1c   :  { %1241 = vsyncadd [#allocation9], 4294966272 }
  0x1d   :  { %1242 = dma.done.wait [#allocation12], 1024  }
  0x1e   :  { %1243 = vsyncadd [#allocation12], 4294966272  ;;  %v180_v0 = vld [vmem:[#allocation10 + $0x18] sm:$0xff]  ;;  %v179_v1 = vld [vmem:[#allocation10 + $0x10] sm:$0xff]  ;;  %vm145_vm0 = vcmask 261120   ;;  %vm293_vm1 = vcmask 64512  }
  0x1f   :  { %987 = vmatpush.msra.mxu2 %v180_v0  ;;  %199 = vmatpush.msra.mxu1 %v180_v0  ;;  %v178_v2 = vld [vmem:[#allocation10 + $0x8] sm:$0xff]  ;;  %v177_v3 = vld [vmem:[#allocation10] sm:$0xff]  ;;  %v215_v6 = vld [vmem:[#allocation11 + $0x18] sm:$0xff]  ;;  %s1255_s6 = smov 120   ;;  %s1256_s16 = smov 104  }
  0x20   :  { %v176_v4 = vld [vmem:[#allocation5 + $0x8] sm:$0xff]  ;;  %v175_v5 = vld [vmem:[#allocation5] sm:$0xff]  ;;  %v214_v7 = vld [vmem:[#allocation11 + $0x10] sm:$0xff]  ;;  %s1257_s17 = smov 112   ;;  %s1258_s18 = smov 16  }
  0x21   :  { %988 = vmatpush.msra.mxu2 %v179_v1  ;;  %200 = vmatpush.msra.mxu1 %v179_v1  ;;  %v213_v8 = vld [vmem:[#allocation11 + $0x8] sm:$0xff]  ;;  %v212_v9 = vld [vmem:[#allocation11] sm:$0xff]  ;;  %v210_v10 = vld [vmem:[#allocation7] sm:$0xff]  ;;  %s1259_s1 = smov 24   ;;  %s1260_s20 = smov [#allocation14]  }
  0x22   :  { %v211_v11 = vld [vmem:[#allocation7 + $0x8] sm:$0xff]  ;;  %v143_v15 = vld [vmem:[#allocation8 + $0x10] sm:$0xff]  ;;  %v142_v16 = vld [vmem:[#allocation8 + $0x8] sm:$0xff]  ;;  %s937_s21 = sshll.u32 %s1260_s20, 4  ;;  %s939_s5 = sshll.u32 %s1470_s8, 4  ;;  %s938_s21 = int_to_ptr.vmem [resolvable:$true] %s937_s21  ;;  %s940_s5 = int_to_ptr.hbm [resolvable:$true] %s939_s5 }
  0x23   :  { %989 = vmatpush.msra.mxu2 %v178_v2  ;;  %201 = vmatpush.msra.mxu1 %v178_v2  ;;  %v144_v14 = vld [vmem:[#allocation8 + $0x18] sm:$0xff]  ;;  %v141_v17 = vld [vmem:[#allocation8] sm:$0xff]  ;;  %v139_v18 = vld [vmem:[#allocation2] sm:$0xff] }
  0x24   :  { %164 = vmatpush.msra.mxu0 %v144_v14  ;;  %v140_v21 = vld [vmem:[#allocation2 + $0x8] sm:$0xff] }
  0x25   :  { %990 = vmatpush.msra.mxu2 %v177_v3  ;;  %202 = vmatpush.msra.mxu1 %v177_v3 }
  0x26   :  { %958 = vmatmul.msk.f32.vlgmr.msra.gmra.mxu2 %vm145_vm0, %v176_v4  ;;  %957 = vmatmul.msk.f32.vlgmr.msra.gmra.mxu1 %vm145_vm0, %v175_v5 }
  0x27   :  { %234 = vmatpush.msrb.mxu2 %v215_v6  ;;  %165 = vmatpush.msra.mxu0 %v143_v15 }
  0x29   :  { %235 = vmatpush.msrb.mxu2 %v214_v7  ;;  %166 = vmatpush.msra.mxu0 %v142_v16 }
  0x2b   :  { %236 = vmatpush.msrb.mxu2 %v213_v8  ;;  %167 = vmatpush.msra.mxu0 %v141_v17 }
  0x2c   :  { %955 = vmatmul.msk.f32.vlgmr.msra.gmra.mxu0 %vm145_vm0, %v139_v18 }
  0x2d   :  { %237 = vmatpush.msrb.mxu2 %v212_v9 }
  0x2e   :  { %959 = vmatmul.msk.f32.vlgmr.msrb.gmra.mxu2 %vm145_vm0, %v210_v10 }
  0x34   :  { %956 = vmatmul.msk.f32.gmra.mxu0 %vm145_vm0, %v140_v21 }
  0x36   :  { %960 = vmatmul.msk.f32.gmra.mxu2 %vm145_vm0, %v211_v11 }
  0xa3   :  { %v204_v12 = vpop.f32.mrf.mxu1 }
  0xa4   :  { %267 = vrot.lane.b32.xlu0 %v204_v12, %s1255_s6  ;;  %961 = vmatpush.xpose.msk.msra.mxu3 %vm293_vm1, %v204_v12 }
  0xa5   :  { %275 = vrot.lane.b32.xlu1 %v204_v12, %s1256_s16 }
  0xa9   :  { %v207_v13 = vpop.f32.mrf.mxu2  ;;  %v169_v31 = vpop.f32.mrf.mxu0 }
  0xaa   :  { %273 = vrot.lane.b32.xlu2 %v207_v13, %s1257_s17  ;;  %963 = vmatpush.xpose.msk.msrb.mxu3 %vm293_vm1, %v207_v13 }
  0xb1   :  { %v239_v19 = vpop.f32.mrf.mxu2  ;;  %v172_v39 = vpop.f32.mrf.mxu0 }
  0xb2   :  { %289 = vrot.lane.b32.xlu1 %v239_v19, %s1256_s16  ;;  %281 = vrot.lane.b32.xlu0 %v239_v19, %s1255_s6  ;;  %v1006_v59 = vpack.i.bf16 %v172_v39, %v169_v31 }
  0xb3   :  { %962 = vmatmul.msk.f32.vlgmr.msra.gmra.mxu3 %vm293_vm1, %v239_v19 }
  0xb9   :  { %v242_v20 = vpop.f32.mrf.mxu2 }
  0xba   :  { %287 = vrot.lane.b32.xlu2 %v242_v20, %s1257_s17  ;;  %269 = vrot.lane.b32.xlu1 %v207_v13, %s1255_s6 }
  0xbb   :  { %271 = vrot.lane.b32.xlu0 %v204_v12, %s1257_s17  ;;  %964 = vmatmul.msk.f32.vlgmr.msrb.gmra.mxu3 %vm293_vm1, %v242_v20 }
  0xc2   :  { %285 = vrot.lane.b32.xlu2 %v239_v19, %s1257_s17  ;;  %277 = vrot.lane.b32.xlu1 %v207_v13, %s1256_s16 }
  0xc3   :  { %283 = vrot.lane.b32.xlu0 %v242_v20, %s1255_s6 }
  0xca   :  { %291 = vrot.lane.b32.xlu2 %v242_v20, %s1256_s16 }
  0xcb   :  { %247 = vrot.lane.b32.xlu0 %v169_v31, %s1255_s6 }
 0x104   :  { %v274_v22 = vpop.permute.xlu2 %273 }
 0x105   :  { %971 = vmatpush.xpose.msk.msra.mxu2 %vm293_vm1, %v274_v22 }
 0x109   :  { %599 = vmatpush.msrb.mxu2 %v172_v39 }
 0x114   :  { %v288_v23 = vpop.permute.xlu2 %287 }
 0x115   :  { %972 = vmatmul.msk.f32.vlgmr.msra.gmra.mxu2 %vm293_vm1, %v288_v23 }
 0x116   :  { %v268_v24 = vpop.permute.xlu0 %267 }
 0x117   :  { %v276_v25 = vpop.permute.xlu1 %275  ;;  %965 = vmatpush.xpose.msk.msra.mxu3 %vm293_vm1, %v268_v24 }
 0x11b   :  { %973 = vmatpush.xpose.msk.msrb.mxu3 %vm293_vm1, %v276_v25 }
 0x11c   :  { %v286_v30 = vpop.permute.xlu2 %285 }
 0x124   :  { %v290_v26 = vpop.permute.xlu1 %289  ;;  %v282_v27 = vpop.permute.xlu0 %281 }
 0x125   :  { %966 = vmatmul.msk.f32.vlgmr.msra.gmra.mxu3 %vm293_vm1, %v282_v27  ;;  %v292_v36 = vpop.permute.xlu2 %291 }
 0x12c   :  { %v270_v28 = vpop.permute.xlu1 %269 }
 0x12d   :  { %v272_v29 = vpop.permute.xlu0 %271  ;;  %967 = vmatpush.xpose.msk.msrb.mxu0 %vm293_vm1, %v270_v28  ;;  %974 = vmatmul.msk.f32.vlgmr.msrb.gmra.mxu3 %vm293_vm1, %v290_v26 }
 0x12e   :  { %969 = vmatpush.xpose.msk.msrb.mxu1 %vm293_vm1, %v272_v29 }
 0x131   :  { %970 = vmatmul.msk.f32.vlgmr.msrb.gmra.mxu1 %vm293_vm1, %v286_v30 }
 0x132   :  { %576 = vmatpush.msra.mxu1 %v169_v31 }
 0x134   :  { %v278_v32 = vpop.permute.xlu1 %277 }
 0x135   :  { %v284_v33 = vpop.permute.xlu0 %283  ;;  %975 = vmatpush.xpose.msk.msra.mxu0 %vm293_vm1, %v278_v32 }
 0x136   :  { %v315_v34 = vpop.f32.mrf.mxu3  ;;  %968 = vmatmul.msk.f32.vlgmr.msrb.gmra.mxu0 %vm293_vm1, %v284_v33 }
 0x137   :  { %v486_v35 = vsel %vm293_vm1, %v315_v34, -inf }
 0x138   :  { %487 = vmax.xlane.f32.xlu1 %v486_v35 }
 0x13d   :  { %v248_v56 = vpop.permute.xlu0 %247 }
 0x13e   :  { %v339_v37 = vpop.f32.mrf.mxu3  ;;  %976 = vmatmul.msk.f32.vlgmr.msra.gmra.mxu0 %vm293_vm1, %v292_v36  ;;  %622 = vmatpush.msra.mxu3 %v248_v56 }
 0x13f   :  { %v489_v38 = vsel %vm293_vm1, %v339_v37, -inf }
 0x140   :  { %490 = vmax.xlane.f32.xlu2 %v489_v38 }
 0x198   :  { %v435_v49 = vpop.f32.mrf.mxu2 }
 0x199   :  { %v501_v54 = vsel %vm293_vm1, %v435_v49, -inf }
 0x1a8   :  { %v363_v40 = vpop.f32.mrf.mxu3 }
 0x1a9   :  { %v492_v41 = vsel %vm293_vm1, %v363_v40, -inf }
 0x1aa   :  { %493 = vmax.xlane.f32.xlu0 %v492_v41 }
 0x1ab   :  { %v488_v42 = vpop.xlane.xlu1 %487 }
 0x1ac   :  { %v510_v43 = vsub.f32 %v315_v34, %v488_v42 }
 0x1ae   :  { %v518_v44 = vmul.f32 1.442695, %v510_v43  ;;  %v411_v45 = vpop.f32.mrf.mxu1 }
 0x1af   :  { %v498_v46 = vsel %vm293_vm1, %v411_v45, -inf }
 0x1b0   :  { %1012 = vpow2.f32 %v518_v44  ;;  %499 = vmax.xlane.f32.xlu1 %v498_v46  ;;  %v459_v55 = vpop.f32.mrf.mxu3 }
 0x1b1   :  { %v504_v58 = vsel %vm293_vm1, %v459_v55, -inf }
 0x1b3   :  { %v491_v47 = vpop.xlane.xlu2 %490  ;;  %v387_v48 = vpop.f32.mrf.mxu0 }
 0x1b4   :  { %v511_v50 = vsub.f32 %v339_v37, %v491_v47  ;;  %v495_v51 = vsel %vm293_vm1, %v387_v48, -inf }
 0x1b5   :  { %496 = vmax.xlane.f32.xlu2 %v495_v51 }
 0x1b6   :  { %v1388_v52 = vpop.eup %1012  ;;  %v520_v53 = vmul.f32 1.442695, %v511_v50 }
 0x1b7   :  { %977 = vmatmul.msk.f32.vlgmr.msra.gmra.mxu1 %vm293_vm1, %v1388_v52 }
 0x1b8   :  { %1014 = vpow2.f32 %v520_v53  ;;  %502 = vmax.xlane.f32.xlu1 %v501_v54 }
 0x1bb   :  { %v483_v57 = vpop.f32.mrf.mxu0 }
 0x1bc   :  { %v507_v61 = vsel %vm293_vm1, %v483_v57, -inf }
 0x1bd   :  { %505 = vmax.xlane.f32.xlu2 %v504_v58 }
 0x1be   :  { %v1394_v60 = vpop.eup %1014  ;;  %1007 = vrot.lane.b32.xlu0 %v1006_v59, %s1257_s17 }
 0x1bf   :  { %978 = vmatmul.msk.f32.vlgmr.msrb.gmra.mxu2 %vm293_vm1, %v1394_v60  ;;  %v537_v33 = vsel %vm293_vm1, %v1394_v60, 0.0 }
 0x1c0   :  { %508 = vmax.xlane.f32.xlu1 %v507_v61 }
 0x1c6   :  { %261 = vrot.lane.b32.xlu0 %v172_v39, %s1256_s16 }
 0x1d5   :  { %259 = vrot.lane.b32.xlu2 %v169_v31, %s1256_s16  ;;  %v534_v31 = vsel %vm293_vm1, %v1388_v52, 0.0 }
 0x1d9   :  { %249 = vrot.lane.b32.xlu1 %v172_v39, %s1255_s6 }
 0x21d   :  { %v494_v62 = vpop.xlane.xlu0 %493 }
 0x21e   :  { %v512_v63 = vsub.f32 %v363_v40, %v494_v62 }
 0x220   :  { %v522_v0 = vmul.f32 1.442695, %v512_v63 }
 0x222   :  { %1016 = vpow2.f32 %v522_v0 }
 0x223   :  { %v500_v1 = vpop.xlane.xlu1 %499 }
 0x224   :  { %v514_v2 = vsub.f32 %v411_v45, %v500_v1 }
 0x226   :  { %v526_v3 = vmul.f32 1.442695, %v514_v2 }
 0x228   :  { %1018 = vpow2.f32 %v526_v3  ;;  %v497_v4 = vpop.xlane.xlu2 %496  ;;  %v1017_v5 = vpop.eup %1016 }
 0x229   :  { %v513_v6 = vsub.f32 %v387_v48, %v497_v4  ;;  %979 = vmatmul.msk.f32.vlgmr.msra.gmra.mxu3 %vm293_vm1, %v1017_v5  ;;  %v540_v7 = vsel %vm293_vm1, %v1017_v5, 0.0 }
 0x22a   :  { %541 = vadd.xlane.f32.xlu0 %v540_v7 }
 0x22b   :  { %v524_v8 = vmul.f32 1.442695, %v513_v6  ;;  %v503_v9 = vpop.xlane.xlu1 %502 }
 0x22c   :  { %v515_v10 = vsub.f32 %v435_v49, %v503_v9 }
 0x22d   :  { %1020 = vpow2.f32 %v524_v8 }
 0x22e   :  { %v1019_v11 = vpop.eup %1018  ;;  %v528_v12 = vmul.f32 1.442695, %v515_v10 }
 0x22f   :  { %v546_v13 = vsel %vm293_vm1, %v1019_v11, 0.0 }
 0x230   :  { %1022 = vpow2.f32 %v528_v12  ;;  %547 = vadd.xlane.f32.xlu2 %v546_v13  ;;  %v506_v14 = vpop.xlane.xlu2 %505  ;;  %v1008_v16 = vpop.permute.xlu0 %1007 }
 0x231   :  { %v516_v15 = vsub.f32 %v459_v55, %v506_v14  ;;  %v1010_v17 = vunpack.i.h.bf16 %v1008_v16  ;;  %v1009_v18 = vunpack.i.l.bf16 %v1008_v16 }
 0x233   :  { %v1021_v19 = vpop.eup %1020  ;;  %v530_v20 = vmul.f32 1.442695, %v516_v15  ;;  %v509_v21 = vpop.xlane.xlu1 %508  ;;  %668 = vmatpush.msrb.mxu1 %v1009_v18  ;;  %691 = vmatpush.msra.mxu2 %v1010_v17 }
 0x234   :  { %v517_v22 = vsub.f32 %v483_v57, %v509_v21  ;;  %v543_v23 = vsel %vm293_vm1, %v1021_v19, 0.0  ;;  %981 = vmatmul.msk.f32.vlgmr.msrb.gmra.mxu1 %vm293_vm1, %v1019_v11  ;;  %v1421_v48 = vpop.f32.mrf.mxu1 }
 0x235   :  { %1024 = vpow2.f32 %v530_v20  ;;  %544 = vadd.xlane.f32.xlu0 %v543_v23 }
 0x236   :  { %v1023_v24 = vpop.eup %1022  ;;  %v532_v25 = vmul.f32 1.442695, %v517_v22 }
 0x237   :  { %982 = vmatmul.msk.f32.vlgmr.msra.gmra.mxu2 %vm293_vm1, %v1023_v24  ;;  %v549_v26 = vsel %vm293_vm1, %v1023_v24, 0.0 }
 0x238   :  { %1026 = vpow2.f32 %v532_v25  ;;  %550 = vadd.xlane.f32.xlu2 %v549_v26  ;;  %v260_v27 = vpop.permute.xlu2 %259  ;;  %v262_v35 = vpop.permute.xlu0 %261 }
 0x239   :  { %714 = vmatpush.msrb.mxu3 %v260_v27 }
 0x23b   :  { %v1025_v28 = vpop.eup %1024 }
 0x23c   :  { %983 = vmatmul.msk.f32.vlgmr.msrb.gmra.mxu3 %vm293_vm1, %v1025_v28  ;;  %v552_v29 = vsel %vm293_vm1, %v1025_v28, 0.0 }
 0x23d   :  { %553 = vadd.xlane.f32.xlu1 %v552_v29 }
 0x23e   :  { %v1027_v30 = vpop.eup %1026 }
 0x23f   :  { %v555_v32 = vsel %vm293_vm1, %v1027_v30, 0.0 }
 0x240   :  { %535 = vadd.xlane.f32.xlu2 %v534_v31  ;;  %556 = vadd.xlane.f32.xlu0 %v555_v32 }
 0x242   :  { %v1427_v5 = vpop.f32.mrf.mxu2 }
 0x245   :  { %538 = vadd.xlane.f32.xlu1 %v537_v33 }
 0x24b   :  { %v250_v34 = vpop.permute.xlu1 %249 }
 0x24c   :  { %645 = vmatpush.msrb.mxu0 %v250_v34 }
 0x24d   :  { %980 = vmatmul.msk.f32.vlgmr.msrb.gmra.mxu0 %vm293_vm1, %v1021_v19 }
 0x24e   :  { %737 = vmatpush.msra.mxu0 %v262_v35 }
 0x255   :  { %984 = vmatmul.msk.f32.vlgmr.msra.gmra.mxu0 %vm293_vm1, %v1027_v30 }
 0x29d   :  { %v542_v36 = vpop.xlane.xlu0 %541 }
 0x29e   :  { %1028 = vrcp.f32 %v542_v36  ;;  %v781_v41 = vand.u32 2147483648, %v542_v36  ;;  %v779_v44 = vand.u32 2147483647, %v542_v36  ;;  %vm775_vm3 = vweird.f32 %v542_v36 }
 0x2a0   :  { %v782_v51 = vor.u32 1.1754944e-38, %v781_v41  ;;  %vm780_vm5 = vcmp.eq.f32.partialorder %v779_v44, 8.507059e+37 }
 0x2a3   :  { %v548_v37 = vpop.xlane.xlu2 %547 }
 0x2a4   :  { %1030 = vrcp.f32 %v548_v37  ;;  %v1029_v38 = vpop.eup %1028  ;;  %v809_v53 = vand.u32 2147483648, %v548_v37  ;;  %v807_v57 = vand.u32 2147483647, %v548_v37  ;;  %vm803_vm7 = vweird.f32 %v548_v37 }
 0x2a5   :  { %v771_v39 = vmul.f32 %v1029_v38, %v542_v36  ;;  %vm776_vm2 = vweird.f32 %v1029_v38 }
 0x2a6   :  { %vm777_vm4 = vmor %vm775_vm3, %vm776_vm2  ;;  %v810_v62 = vor.u32 1.1754944e-38, %v809_v53  ;;  %vm808_vm9 = vcmp.eq.f32.partialorder %v807_v57, 8.507059e+37  ;;  %v897_v53 = vld [vmem:[#allocation13 + $0x18] sm:$0xff]  ;;  %v894_v57 = vld [vmem:[#allocation13] sm:$0xff] }
 0x2a7   :  { %v772_v40 = vsub.f32 1.0, %v771_v39  ;;  %920 = vmatpush.msra.mxu1 %v897_v53 }
 0x2a8   :  { %v1419_v46 = vpop.xlane.xlu0 %544 }
 0x2a9   :  { %v773_v43 = vmul.f32 %v1029_v38, %v772_v40  ;;  %v795_v36 = vand.u32 2147483648, %v1419_v46 }
 0x2aa   :  { %v1031_v42 = vpop.eup %1030 }
 0x2ab   :  { %v799_v45 = vmul.f32 %v1031_v42, %v548_v37  ;;  %v551_v47 = vpop.xlane.xlu2 %550  ;;  %v774_v49 = vadd.f32 %v1029_v38, %v773_v43  ;;  %vm804_vm6 = vweird.f32 %v1031_v42  ;;  %v793_v37 = vand.u32 2147483647, %v1419_v46 }
 0x2ac   :  { %1032 = vrcp.f32 %v551_v47  ;;  %v624_v54 = vpop.f32.mrf.mxu3  ;;  %vm805_vm8 = vmor %vm803_vm7, %vm804_vm6  ;;  %v821_v11 = vand.u32 2147483647, %v551_v47  ;;  %v823_v12 = vand.u32 2147483648, %v551_v47  ;;  %vm817_vm11 = vweird.f32 %v551_v47 }
 0x2ad   :  { %v800_v50 = vsub.f32 1.0, %v799_v45  ;;  %1034 = vrcp.f32 %v1419_v46  ;;  %v778_v52 = vsel %vm777_vm4, %v1029_v38, %v774_v49  ;;  %v796_v40 = vor.u32 1.1754944e-38, %v795_v36 }
 0x2ae   :  { %v783_v55 = vsel %vm780_vm5, %v782_v51, %v778_v52  ;;  %vm822_vm13 = vcmp.eq.f32.partialorder %v821_v11, 8.507059e+37  ;;  %v824_v17 = vor.u32 1.1754944e-38, %v823_v12  ;;  %vm789_vm5 = vweird.f32 %v1419_v46 }
 0x2af   :  { %v801_v56 = vmul.f32 %v1031_v42, %v800_v50  ;;  %v856_v58 = vmul.f32 %v783_v55, %v624_v54  ;;  %vm794_vm7 = vcmp.eq.f32.partialorder %v793_v37, 8.507059e+37  ;;  %v896_v54 = vld [vmem:[#allocation13 + $0x10] sm:$0xff]  ;;  %v895_v55 = vld [vmem:[#allocation13 + $0x8] sm:$0xff] }
 0x2b0   :  { %v554_v59 = vpop.xlane.xlu1 %553  ;;  %921 = vmatpush.msra.mxu1 %v896_v54 }
 0x2b1   :  { %1036 = vrcp.f32 %v554_v59  ;;  %v802_v60 = vadd.f32 %v1031_v42, %v801_v56  ;;  %864 = vrot.lane.b32.xlu0 %v856_v58, %s1248_s14  ;;  %v670_v3 = vpop.f32.mrf.mxu1  ;;  %v837_v18 = vand.u32 2147483648, %v554_v59  ;;  %v835_v22 = vand.u32 2147483647, %v554_v59 }
 0x2b2   :  { %v1033_v61 = vpop.eup %1032  ;;  %vm831_vm15 = vweird.f32 %v554_v59  ;;  %922 = vmatpush.msra.mxu1 %v895_v55 }
 0x2b3   :  { %v813_v63 = vmul.f32 %v1033_v61, %v551_v47  ;;  %v806_v0 = vsel %vm805_vm8, %v1031_v42, %v802_v60  ;;  %v1425_v1 = vpop.xlane.xlu0 %556  ;;  %v1035_v2 = vpop.eup %1034  ;;  %vm818_vm10 = vweird.f32 %v1033_v61  ;;  %v838_v28 = vor.u32 1.1754944e-38, %v837_v18 }
 0x2b4   :  { %v811_v4 = vsel %vm808_vm9, %v810_v62, %v806_v0  ;;  %1038 = vrcp.f32 %v1425_v1  ;;  %v785_v9 = vmul.f32 %v1035_v2, %v1419_v46  ;;  %vm819_vm12 = vmor %vm817_vm11, %vm818_vm10  ;;  %vm836_vm3 = vcmp.eq.f32.partialorder %v835_v22, 8.507059e+37  ;;  %v536_v56 = vpop.xlane.xlu2 %535  ;;  %923 = vmatpush.msra.mxu1 %v894_v57 }
 0x2b5   :  { %v814_v6 = vsub.f32 1.0, %v813_v63  ;;  %v858_v7 = vmul.f32 %v811_v4, %v670_v3  ;;  %vm790_vm4 = vweird.f32 %v1035_v2  ;;  %v851_v45 = vand.u32 2147483648, %v1425_v1 }
 0x2b6   :  { %v786_v16 = vsub.f32 1.0, %v785_v9  ;;  %vm791_vm6 = vmor %vm789_vm5, %vm790_vm4  ;;  %vm845_vm9 = vweird.f32 %v1425_v1  ;;  %v849_v47 = vand.u32 2147483647, %v1425_v1  ;;  %1040 = vrcp.f32 %v536_v56 }
 0x2b7   :  { %v1037_v8 = vpop.eup %1036  ;;  %872 = vrot.lane.b32.xlu2 %v858_v7, %s1258_s18  ;;  %v815_v10 = vmul.f32 %v1033_v61, %v814_v6  ;;  %v852_v49 = vor.u32 1.1754944e-38, %v851_v45  ;;  %v753_v0 = vand.u32 2147483648, %v536_v56 }
 0x2b8   :  { %v827_v13 = vmul.f32 %v1037_v8, %v554_v59  ;;  %vm832_vm14 = vweird.f32 %v1037_v8  ;;  %v787_v29 = vmul.f32 %v1035_v2, %v786_v16  ;;  %vm850_vm11 = vcmp.eq.f32.partialorder %v849_v47, 8.507059e+37 }
 0x2b9   :  { %v816_v15 = vadd.f32 %v1033_v61, %v815_v10  ;;  %vm833_vm2 = vmor %vm831_vm15, %vm832_vm14  ;;  %v754_v4 = vor.u32 1.1754944e-38, %v753_v0 }
 0x2ba   :  { %v828_v14 = vsub.f32 1.0, %v827_v13  ;;  %v1039_v19 = vpop.eup %1038  ;;  %v693_v23 = vpop.f32.mrf.mxu2  ;;  %v788_v35 = vadd.f32 %v1035_v2, %v787_v29  ;;  %v1011_v29 = vld [vmem:[%s1469_s7] ss:$0 sm:$0xff] }
 0x2bb   :  { %v820_v20 = vsel %vm819_vm12, %v1033_v61, %v816_v15  ;;  %v841_v27 = vmul.f32 %v1039_v19, %v1425_v1  ;;  %vm846_vm8 = vweird.f32 %v1039_v19  ;;  %v539_v61 = vpop.xlane.xlu1 %538 }
 0x2bc   :  { %v829_v21 = vmul.f32 %v1037_v8, %v828_v14  ;;  %v825_v24 = vsel %vm822_vm13, %v824_v17, %v820_v20  ;;  %v792_v38 = vsel %vm791_vm6, %v1035_v2, %v788_v35  ;;  %vm847_vm10 = vmor %vm845_vm9, %vm846_vm8  ;;  %v1041_v58 = vpop.eup %1040  ;;  %1042 = vrcp.f32 %v539_v61 }
 0x2bd   :  { %v859_v25 = vmul.f32 %v825_v24, %v693_v23  ;;  %v842_v34 = vsub.f32 1.0, %v841_v27  ;;  %v797_v42 = vsel %vm794_vm7, %v796_v40, %v792_v38  ;;  %v743_v59 = vmul.f32 %v1041_v58, %v536_v56 }
 0x2be   :  { %v830_v26 = vadd.f32 %v1037_v8, %v829_v21  ;;  %vm748_vm12 = vweird.f32 %v1041_v58  ;;  %vm747_vm13 = vweird.f32 %v536_v56  ;;  %v751_v2 = vand.u32 2147483647, %v536_v56 }
 0x2bf   :  { %874 = vrot.lane.b32.xlu2 %v859_v25, %s1258_s18  ;;  %v716_v31 = vpop.f32.mrf.mxu3  ;;  %v843_v39 = vmul.f32 %v1039_v19, %v842_v34  ;;  %v744_v60 = vsub.f32 1.0, %v743_v59  ;;  %vm749_vm14 = vmor %vm747_vm13, %vm748_vm12  ;;  %v767_v18 = vand.u32 2147483648, %v539_v61  ;;  %vm761_vm5 = vweird.f32 %v539_v61 }
 0x2c0   :  { %v834_v30 = vsel %vm833_vm2, %v1037_v8, %v830_v26  ;;  %vm752_vm15 = vcmp.eq.f32.partialorder %v751_v2, 8.507059e+37  ;;  %vm888_vm2 = vcmask 130048  }
 0x2c1   :  { %v839_v32 = vsel %vm836_vm3, %v838_v28, %v834_v30  ;;  %v844_v44 = vadd.f32 %v1039_v19, %v843_v39  ;;  %v745_v62 = vmul.f32 %v1041_v58, %v744_v60  ;;  %vm891_vm3 = vcmask 195584  }
 0x2c2   :  { %v860_v33 = vmul.f32 %v839_v32, %v716_v31  ;;  %v1043_v1 = vpop.eup %1042  ;;  %v768_v20 = vor.u32 1.1754944e-38, %v767_v18 }
 0x2c3   :  { %v848_v46 = vsel %vm847_vm10, %v1039_v19, %v844_v44  ;;  %v746_v63 = vadd.f32 %v1041_v58, %v745_v62  ;;  %v757_v6 = vmul.f32 %v1043_v1, %v539_v61  ;;  %vm762_vm4 = vweird.f32 %v1043_v1 }
 0x2c4   :  { %880 = vrot.lane.b32.xlu1 %v860_v33, %s1259_s1  ;;  %v853_v51 = vsel %vm850_vm11, %v852_v49, %v848_v46  ;;  %v765_v19 = vand.u32 2147483647, %v539_v61  ;;  %vm763_vm6 = vmor %vm761_vm5, %vm762_vm4 }
 0x2c5   :  { %v750_v3 = vsel %vm749_vm14, %v1041_v58, %v746_v63  ;;  %v758_v8 = vsub.f32 1.0, %v757_v6 }
 0x2c6   :  { %v755_v7 = vsel %vm752_vm15, %v754_v4, %v750_v3  ;;  %vm766_vm7 = vcmp.eq.f32.partialorder %v765_v19, 8.507059e+37 }
 0x2c7   :  { %v854_v10 = vmul.f32 %v755_v7, %v1421_v48  ;;  %v759_v12 = vmul.f32 %v1043_v1, %v758_v8 }
 0x2c9   :  { %v760_v17 = vadd.f32 %v1043_v1, %v759_v12 }
 0x2ca   :  { %v647_v41 = vpop.f32.mrf.mxu0 }
 0x2cb   :  { %v857_v43 = vmul.f32 %v797_v42, %v647_v41  ;;  %v764_v48 = vsel %vm763_vm6, %v1043_v1, %v760_v17 }
 0x2cc   :  { %v769_v22 = vsel %vm766_vm7, %v768_v20, %v764_v48 }
 0x2cd   :  { %866 = vrot.lane.b32.xlu0 %v857_v43, %s1248_s14  ;;  %v855_v23 = vmul.f32 %v769_v22, %v1427_v5 }
 0x2d2   :  { %v739_v50 = vpop.f32.mrf.mxu0 }
 0x2d3   :  { %v861_v52 = vmul.f32 %v853_v51, %v739_v50 }
 0x2d5   :  { %882 = vrot.lane.b32.xlu0 %v861_v52, %s1259_s1 }
 0x311   :  { %v873_v13 = vpop.permute.xlu2 %872 }
 0x319   :  { %v875_v25 = vpop.permute.xlu2 %874 }
 0x323   :  { %v865_v9 = vpop.permute.xlu0 %864 }
 0x324   :  { %v886_v11 = vsel %vm293_vm1, %v854_v10, %v865_v9 }
 0x325   :  { %v889_v14 = vsel %vm888_vm2, %v886_v11, %v873_v13 }
 0x336   :  { %v881_v15 = vpop.permute.xlu1 %880 }
 0x337   :  { %v892_v16 = vsel %vm891_vm3, %v889_v14, %v881_v15 }
 0x338   :  { %985 = vmatmul.msk.f32.vlgmr.msra.gmra.mxu1 %vm145_vm0, %v892_v16 }
 0x33f   :  { %v867_v21 = vpop.permute.xlu0 %866 }
 0x340   :  { %v887_v24 = vsel %vm293_vm1, %v855_v23, %v867_v21 }
 0x341   :  { %v890_v27 = vsel %vm888_vm2, %v887_v24, %v875_v25 }
 0x347   :  { %v883_v26 = vpop.permute.xlu0 %882 }
 0x348   :  { %v893_v28 = vsel %vm891_vm3, %v890_v27, %v883_v26 }
 0x349   :  { %986 = vmatmul.msk.f32.gmra.mxu1 %vm145_vm0, %v893_v28 }
 0x3b5   :  { %v925_v30 = vpop.f32.mrf.mxu1 }
 0x3b6   :  { %v926_v31 = vadd.f32 %v1011_v29, %v925_v30 }
 0x3b8   :  { %931 = vst.msk [vmem:[#allocation14] sm:$0xff] %vm145_vm0, %v926_v31 }
 0x3c6   :  { %v928_v5 = vpop.f32.mrf.mxu1 }
 0x3c7   :  { %v929_v32 = vadd.f32 %v1011_v29, %v928_v5 }
 0x3c9   :  { %932 = vst.msk [vmem:[#allocation14 + $0x8] sm:$0xff] %vm145_vm0, %v929_v32 }
 0x3ca   :  { %945 = dma.vmem_to_hbm [thread:$0]  %s938_s21, 256, %s940_s5, [#allocation4], %s1247_s13, %s1247_s13, %s1248_s14  }
 0x3cb   :  { %1244 = dma.done.wait [#allocation4], 256  }
 0x3cc   :  { %1245 = vsyncadd [#allocation4], 4294967040 }
 0x3cd   :  { %950 = vsyncpa [#allocation3], 1 }
 0x3ce   :  { %951 = vsyncpa [#allocation6], 1 }
 0x3cf   :  { %952 = vsyncpa [#allocation9], 1 }
 0x3d0   :  { %953 = vsyncpa [#allocation12], 1 }
 0x3d1   :  { %954 = vsyncpa [#allocation4], 1 }

</bundles_post_ra>
